<compile_context>
chip_gen: v7x
topology: tpu7x:2x2x1
jax: 0.10.0
libtpu: 0.0.40
codegen_flags: <defaults>
</compile_context>

<pallas_src>
import jax
import jax.numpy as jnp
from jax.experimental import pallas as pl
from jax.experimental.pallas import tpu as pltpu


def _round_up(n, m):
    return ((n + m - 1) // m) * m


def _mlp_fused_kernel(x_ref, w1_ref, b1_ref, w2_ref, b2_ref, o_ref):
    """Fused: out = relu(x @ w1 + b1) @ w2 + b2 for one batch tile (all heads at once).

    x arrives f32 and is downcast to the weight dtype (bf16) in-kernel (free under
    the DMA shadow).  Accumulation, bias add and ReLU are f32.
    """
    x = x_ref[...].astype(w1_ref.dtype)
    h = jnp.dot(x, w1_ref[...], preferred_element_type=jnp.float32)
    h = jnp.maximum(h + b1_ref[...], 0.0)
    # Intentional precision choice: downcast the f32 hidden activations to the
    # weight dtype (bf16) for the second MXU matmul; accumulate in f32.
    # TODO(synk): for very large H, chunk this second matmul over H (fori_loop,
    # unroll=True) so the full f32 h and its bf16 copy are never both live.
    y = jnp.dot(h.astype(w2_ref.dtype), w2_ref[...],
                preferred_element_type=jnp.float32)
    o_ref[...] = (y + b2_ref[...]).astype(o_ref.dtype)


def _mlp_fused(x, w1, b1, w2, b2, *, bm=512, out_dtype=jnp.float32):
    """Run the fused MLP (inlayer + ReLU + all heads) kernel, tiling over batch.

    w1/w2 are pre-cast bf16 (in_features, out_features); b1/b2 are f32 (1, out).
    Output shape is exactly (B, N_total) — no padding, no wrapper slice.
    Set out_dtype=jnp.bfloat16 to halve output HBM bytes if f32 parity is not needed.
    """
    B, D_in = x.shape
    H = w1.shape[1]
    N = w2.shape[1]

    # Batch tile: large, sublane-aligned, capped at the (rounded-up) batch, and
    # split so the grid has >=2 steps when B > 8 (lets the 'parallel' batch axis
    # shard across v7x's 2 TensorCores and gives DMA/compute overlap).
    bm = min(bm, _round_up(B, 8))
    if B > 8:
        bm = min(bm, _round_up(pl.cdiv(B, 2), 8))
    grid = (pl.cdiv(B, bm),)

    # Explicit VMEM budget (v7x-safe: <=48 MiB of its 64 MiB physical VMEM;
    # v5e/v6e have 128 MiB so this is conservative there).
    out_isz = jnp.dtype(out_dtype).itemsize
    est = (2 * bm * D_in * 4            # x (f32), double-buffered
           + 2 * bm * N * out_isz       # out, double-buffered
           + (D_in * H + H * N) * 2     # bf16 weights, single-buffered (Buffered(1))
           + (H + N) * 4                # f32 biases
           + bm * H * (4 + 2))          # live f32 hidden + bf16 copy
    vmem_limit = int(min(max(2 * est, 16 << 20), 48 << 20))
    # TODO(synk): if the weights alone exceed this budget (very large D_in/H),
    # add a reduction grid axis over D_in/H with an f32 scratch accumulator
    # ('arbitrary' semantics) instead of shrinking bm.

    # Weight/bias blocks have a constant index_map -> single-buffer them.
    w_spec = lambda shp: pl.BlockSpec(shp, lambda i: (0, 0),
                                      pipeline_mode=pl.Buffered(1))

    out = pl.pallas_call(
        _mlp_fused_kernel,
        out_shape=jax.ShapeDtypeStruct((B, N), out_dtype),
        grid_spec=pltpu.PrefetchScalarGridSpec(
            num_scalar_prefetch=0,
            grid=grid,
            in_specs=[
                pl.BlockSpec((bm, D_in), lambda i: (i, 0)),   # x batch tile (f32)
                w_spec((D_in, H)),                            # W1 (bf16, resident)
                w_spec((1, H)),                               # b1 (f32)
                w_spec((H, N)),                               # fused W2 (bf16, resident)
                w_spec((1, N)),                               # fused b2 (f32)
            ],
            out_specs=pl.BlockSpec((bm, N), lambda i: (i, 0)),
        ),
        compiler_params=pltpu.CompilerParams(
            dimension_semantics=("parallel",),    # only matters on v7x (2 TCs)
            vmem_limit_bytes=vmem_limit),
    )(x, w1, b1, w2, b2)
    return out


def init_linear(key, fan_in, fan_out, dtype=jnp.float32):
    """PyTorch nn.Linear default init: U(-1/sqrt(fan_in), 1/sqrt(fan_in)).
    Weight is returned pre-transposed as (fan_in, fan_out)."""
    kw, kb = jax.random.split(key)
    bound = 1.0 / jnp.sqrt(jnp.asarray(fan_in, dtype))
    w = jax.random.uniform(kw, (fan_in, fan_out), dtype, -bound, bound)
    b = jax.random.uniform(kb, (1, fan_out), dtype, -bound, bound)
    return w, b


def init_mlp_params(key, input_size, output_size, hidden_size):
    keys = jax.random.split(key, 8)
    w1, b1 = init_linear(keys[0], input_size, hidden_size)
    if isinstance(output_size, (list, tuple)):
        heads = [init_linear(keys[1 + i], hidden_size, o)
                 for i, o in enumerate(output_size)]
    else:
        heads = init_linear(keys[1], hidden_size, output_size)
    return {"w1": w1, "b1": b1, "heads": heads}


def prepare_mlp_params(params, output_size, compute_dtype=jnp.bfloat16):
    """One-time (out of the hot path) weight prep: fuse heads along the output
    axis, cast matmul operands to bf16, keep biases f32."""
    w1, b1 = params["w1"], params["b1"]
    if isinstance(output_size, (list, tuple)):
        w2 = jnp.concatenate([w for (w, _) in params["heads"]], axis=1)
        b2 = jnp.concatenate([b for (_, b) in params["heads"]], axis=1)
    else:
        w2, b2 = params["heads"]
    return {
        "w1": w1.astype(compute_dtype),
        "b1": b1.astype(jnp.float32),
        "w2": w2.astype(compute_dtype),
        "b2": b2.astype(jnp.float32),
    }


def mlp_forward(prepared, x, output_size, *, bm=512, out_dtype=jnp.float32):
    # TODO(synk): pp.Preprocessor() is external to this module; treated as identity here.
    y = _mlp_fused(x, prepared["w1"], prepared["b1"], prepared["w2"],
                   prepared["b2"], bm=bm, out_dtype=out_dtype)
    if isinstance(output_size, (list, tuple)):
        preds, off = [], 0
        for o in output_size:
            p = y[:, off:off + o]
            off += o
            # torch .squeeze(1): drop axis 1 only if its size is 1
            if p.shape[1] == 1:
                p = jnp.squeeze(p, axis=1)
            preds.append(p)
        return preds
    else:
        if y.shape[1] == 1:
            y = jnp.squeeze(y, axis=1)
        return y


if __name__ == "__main__":
    # Small shapes consistent with the module.  batch=72 gives a 2-step grid
    # (bm=40) with a trailing partial tile (no wrapper padding, no output slice).
    batch = 72
    input_size = 16
    hidden_size = 32
    output_size = (1, 1, 3)   # ModuleList branch (incl. a non-squeezed head)

    key = jax.random.PRNGKey(0)
    kx, kp = jax.random.split(key)
    x = jax.random.normal(kx, (batch, input_size), jnp.float32)
    params = init_mlp_params(kp, input_size, output_size, hidden_size)
    prepared = prepare_mlp_params(params, output_size)      # one-time prep

    preds = mlp_forward(prepared, x, output_size)
    preds = jax.block_until_ready(preds)

    # --- Reference checks ---------------------------------------------------
    w1, b1 = params["w1"], params["b1"]

    # (a) bf16-emulated reference (same precision recipe as the kernel): tight.
    h_emul = jnp.maximum(
        jnp.dot(x.astype(jnp.bfloat16), w1.astype(jnp.bfloat16),
                preferred_element_type=jnp.float32) + b1, 0.0)
    # (b) pure f32 reference: loose sanity bound for bf16 rounding.
    h_f32 = jnp.maximum(x @ w1 + b1, 0.0)

    for p, (w2, b2), o in zip(preds, params["heads"], output_size):
        y_emul = jnp.dot(h_emul.astype(jnp.bfloat16), w2.astype(jnp.bfloat16),
                         preferred_element_type=jnp.float32) + b2
        y_f32 = h_f32 @ w2 + b2
        if y_emul.shape[1] == 1:
            y_emul = jnp.squeeze(y_emul, axis=1)
            y_f32 = jnp.squeeze(y_f32, axis=1)
        assert p.shape == y_emul.shape, (p.shape, y_emul.shape)
        assert jnp.allclose(p, y_emul, atol=1e-2, rtol=1e-2), \
            float(jnp.max(jnp.abs(p - y_emul)))
        assert jnp.allclose(p, y_f32, atol=1e-1, rtol=1e-1), \
            float(jnp.max(jnp.abs(p - y_f32)))

    # Also exercise the single-head (non-ModuleList) branch.
    out_single = 4
    params_s = init_mlp_params(kp, input_size, out_single, hidden_size)
    prepared_s = prepare_mlp_params(params_s, out_single)
    y_s = jax.block_until_ready(mlp_forward(prepared_s, x, out_single))
    w2s, b2s = params_s["heads"]
    h_s = jnp.maximum(x @ params_s["w1"] + params_s["b1"], 0.0)
    y_s_ref = h_s @ w2s + b2s
    assert y_s.shape == y_s_ref.shape
    assert jnp.allclose(y_s, y_s_ref, atol=1e-1, rtol=1e-1), \
        float(jnp.max(jnp.abs(y_s - y_s_ref)))

    print("KERNEL_OK")
</pallas_src>

<mosaic_0001>
module attributes {stable_mosaic.version = 11 : i64} {
  func.func @_mlp_fused_kernel(%arg0: i32, %arg1: memref<40x16xf32, #tpu.memory_space<vmem>>, %arg2: memref<16x32xbf16, #tpu.memory_space<vmem>>, %arg3: memref<1x32xf32, #tpu.memory_space<vmem>>, %arg4: memref<32x5xbf16, #tpu.memory_space<vmem>>, %arg5: memref<1x5xf32, #tpu.memory_space<vmem>>, %arg6: memref<40x5xf32, #tpu.memory_space<vmem>>) attributes {dimension_semantics = [#tpu.dimension_semantics<parallel>], iteration_bounds = array<i64: 2>, scalar_prefetch = 0 : i64, scratch_operands = 0 : i64, tpu.core_type = #tpu.core_type<tc>, window_params = [{transform_indices = @transform_0, window_bounds = array<i64: 40, 16>}, {pipeline_mode = #tpu.pipeline_mode<synchronous>, transform_indices = @transform_1, window_bounds = array<i64: 16, 32>}, {pipeline_mode = #tpu.pipeline_mode<synchronous>, transform_indices = @transform_2, window_bounds = array<i64: 1, 32>}, {pipeline_mode = #tpu.pipeline_mode<synchronous>, transform_indices = @transform_3, window_bounds = array<i64: 32, 5>}, {pipeline_mode = #tpu.pipeline_mode<synchronous>, transform_indices = @transform_4, window_bounds = array<i64: 1, 5>}, {transform_indices = @transform_5, window_bounds = array<i64: 40, 5>}]} {
    %c0 = arith.constant 0 : index
    %c0_0 = arith.constant 0 : index
    %0 = vector.load %arg1[%c0, %c0_0] : memref<40x16xf32, #tpu.memory_space<vmem>>, vector<40x16xf32>
    %1 = arith.truncf %0 : vector<40x16xf32> to vector<40x16xbf16>
    %c0_1 = arith.constant 0 : index
    %c0_2 = arith.constant 0 : index
    %2 = vector.load %arg2[%c0_1, %c0_2] : memref<16x32xbf16, #tpu.memory_space<vmem>>, vector<16x32xbf16>
    %cst = arith.constant dense<0.000000e+00> : vector<40x32xf32>
    %3 = tpu.matmul %1, %2, %cst {dimension_numbers = #tpu.dot_dimension_numbers<[1], [0], [0], [1], [0, 0, 1, 1], [], []>} : vector<40x16xbf16>, vector<16x32xbf16>, vector<40x32xf32> -> vector<40x32xf32>
    %c0_3 = arith.constant 0 : index
    %c0_4 = arith.constant 0 : index
    %4 = vector.load %arg3[%c0_3, %c0_4] : memref<1x32xf32, #tpu.memory_space<vmem>>, vector<1x32xf32>
    %5 = vector.broadcast %4 : vector<1x32xf32> to vector<40x32xf32>
    %6 = arith.addf %3, %5 : vector<40x32xf32>
    %cst_5 = arith.constant 0.000000e+00 : f32
    %7 = vector.broadcast %cst_5 : f32 to vector<40x32xf32>
    %8 = arith.maximumf %6, %7 : vector<40x32xf32>
    %9 = arith.truncf %8 : vector<40x32xf32> to vector<40x32xbf16>
    %c0_6 = arith.constant 0 : index
    %c0_7 = arith.constant 0 : index
    %10 = vector.load %arg4[%c0_6, %c0_7] : memref<32x5xbf16, #tpu.memory_space<vmem>>, vector<32x5xbf16>
    %cst_8 = arith.constant dense<0.000000e+00> : vector<40x5xf32>
    %11 = tpu.matmul %9, %10, %cst_8 {dimension_numbers = #tpu.dot_dimension_numbers<[1], [0], [0], [1], [0, 0, 1, 1], [], []>} : vector<40x32xbf16>, vector<32x5xbf16>, vector<40x5xf32> -> vector<40x5xf32>
    %c0_9 = arith.constant 0 : index
    %c0_10 = arith.constant 0 : index
    %12 = vector.load %arg5[%c0_9, %c0_10] : memref<1x5xf32, #tpu.memory_space<vmem>>, vector<1x5xf32>
    %13 = vector.broadcast %12 : vector<1x5xf32> to vector<40x5xf32>
    %14 = arith.addf %11, %13 : vector<40x5xf32>
    %c0_11 = arith.constant 0 : index
    %c0_12 = arith.constant 0 : index
    %15 = vector.load %arg6[%c0_11, %c0_12] : memref<40x5xf32, #tpu.memory_space<vmem>>, vector<40x5xf32>
    tpu.vector_store %arg6[%c0_11, %c0_12], %14 {strides = array<i32>} : memref<40x5xf32, #tpu.memory_space<vmem>>, vector<40x5xf32>,
    return
  }
  func.func @transform_0(%arg0: i32) -> (i32, i32) {
    %c0_i32 = arith.constant 0 : i32
    %c0_i32_0 = arith.constant 0 : i32
    return %arg0, %c0_i32 : i32, i32
  }
  func.func @transform_1(%arg0: i32) -> (i32, i32) {
    %c0_i32 = arith.constant 0 : i32
    %c0_i32_0 = arith.constant 0 : i32
    %c0_i32_1 = arith.constant 0 : i32
    return %c0_i32, %c0_i32_0 : i32, i32
  }
  func.func @transform_2(%arg0: i32) -> (i32, i32) {
    %c0_i32 = arith.constant 0 : i32
    %c0_i32_0 = arith.constant 0 : i32
    %c0_i32_1 = arith.constant 0 : i32
    return %c0_i32, %c0_i32_0 : i32, i32
  }
  func.func @transform_3(%arg0: i32) -> (i32, i32) {
    %c0_i32 = arith.constant 0 : i32
    %c0_i32_0 = arith.constant 0 : i32
    %c0_i32_1 = arith.constant 0 : i32
    return %c0_i32, %c0_i32_0 : i32, i32
  }
  func.func @transform_4(%arg0: i32) -> (i32, i32) {
    %c0_i32 = arith.constant 0 : i32
    %c0_i32_0 = arith.constant 0 : i32
    %c0_i32_1 = arith.constant 0 : i32
    return %c0_i32, %c0_i32_0 : i32, i32
  }
  func.func @transform_5(%arg0: i32) -> (i32, i32) {
    %c0_i32 = arith.constant 0 : i32
    %c0_i32_0 = arith.constant 0 : i32
    return %arg0, %c0_i32 : i32, i32
  }
}

</mosaic_0001>

<bundles_post_ra>
// kernel: tpu_custom_call.1
= control target key start
LH: loop header
LB: loop body
LE: loop exit
PB: predicated region body
PF: predicated region fallthrough
CT: control target
= control target key end

     0   :  { %s959_s18 = smov 0   ;;  %s961_s19 = smov 0   ;;  %s1089_s0 = inlined_call_operand.vmem [shape: f32[72,16], index: 0, kind: input, shape index: {}]   ;;  %s1090_s1 = inlined_call_operand.vmem [shape: bf16[16,32], index: 1, kind: input, shape index: {}]   ;;  %s1091_s2 = inlined_call_operand.vmem [shape: f32[1,32], index: 2, kind: input, shape index: {}]   ;;  %s1092_s3 = inlined_call_operand.vmem [shape: bf16[32,5], index: 3, kind: input, shape index: {}]   ;;  %s1093_s4 = inlined_call_operand.vmem [shape: f32[1,5], index: 4, kind: input, shape index: {}]   ;;  %s1094_s5 = inlined_call_operand.vmem [shape: f32[72,5], index: 5, kind: output, shape index: {}]  }
   0x1   :  { %s963_s20 = smov 0  }
   0x2 LB: > { %s972_s21 = sadd.s32 4294967295, %s893_s20   ;;  %s974_s22 = sadd.s32 1, %s893_s20   ;;  %s893_s20 = sphi %s963_s20, %s1101_s20   ;;  %s889_s19 = sphi %s961_s19, %s1100_s19   ;;  %s885_s18 = sphi %s959_s18, %s1099_s18  }
   0x3   : > { %s129_s23 = ssub.s32 %s893_s20, %s974_s22  ;;  %s132_s24 = sadd.s32 1, %s889_s19 }
   0x4   : > { %p130_p0 = scmp.eq.s32.totalorder %s129_s23, 0  ;;  %p142_p1 = scmp.ne.s32.totalorder %s889_s19, %s885_s18 }
   0x5   : > { %p143_p2 = scmp.eq.s32.totalorder %s972_s21, 1  ;;  %p675_p3 = scmp.ge.s32.totalorder %s893_s20, 1 }
   0x6   : > { %s982_s25 = scalar_select %p130_p0, %s889_s19, %s132_s24  }
   0x7   : > { %p984_p4 = por %p143_p2, %p142_p1  ;;  %p196_p5 = scmp.lt.s32.totalorder %s893_s20, 3 }
   0x9   : > { %p197_p6 = pnand %p675_p3, %p196_p5 }
   0xa   : > { %v832_v0 = vld [vmem:[%s1090_s1] sm:$0xff] (!%p197_p6)   ;;  %v927_v1 = vmov (!%p197_p6), 0.0   ;;  %s992_s29 = smul.u32 (!%p197_p6), 5, %s972_s21  ;;  %vm928_vm0 = vmmov (!%p197_p6), 0   ;;  %vm270_vm1 = vcmask (!%p197_p6), 130048   ;;  %v834_v11 = vld [vmem:[%s1092_s3 + $0x8] sm:$0xff] (!%p197_p6)  }
   0xb   : > { %200 = sbr.rel (%p197_p6) target bundleno = 537 (0x219), region = 40  ;;  %710 = vmatprep.subr.bf16.mxu0 (!%p197_p6), %v927_v1  ;;  %724 = vmatprep.subr.bf16.mxu1 (!%p197_p6), %v927_v1  ;;  %v833_v10 = vld [vmem:[%s1092_s3] sm:$0xff] (!%p197_p6)   ;;  %vm367_vm2 = vcmask (!%p197_p6), 261120   ;;  %s224_s16 = sand.u32 (!%p197_p6), 1, %s885_s18   ;;  %vm433_vm3 = vcmask (!%p197_p6), 39936  }
   0xc   : > { %711 = vmatpush3.bf16.msra.mxu0 (!%p197_p6), %v832_v0  ;;  %712 = vmatprep.mubr.msk.bf16.mxu0 (!%p197_p6), %vm928_vm0, %v927_v1  ;;  %p232_p7 = scmp.lt.s32.totalorder (!%p197_p6), %s992_s29, 8  ;;  %v677_v12 = vld [vmem:[%s1091_s2] ss:$0 sm:$0xff] (!%p197_p6)  ;;  %s740_s17 = smul.u32 (!%p197_p6), 40, %s224_s16 }
   0xd   : > { %728 = vmatprep.mubr.msk.bf16.mxu1 (!%p197_p6), %vm928_vm0, %v927_v1  ;;  %725 = vmatpush3.bf16.msra.mxu1 (!%p197_p6), %v833_v10  ;;  %v682_v38 = vld [vmem:[%s1093_s4] ss:$0 sm:$0xff] (!%p197_p6) }
   0xe   : > { %726 = vmatprep.subr.bf16.mxu1 (!%p197_p6), %v927_v1  ;;  %s1021_s24 = scalar_lea.vmem (!%p197_p6), [#allocation2], %s740_s17  }
  0x11   : > { %727 = vmatpush3.bf16.msra.mxu1 (!%p197_p6), %v834_v11 }
  0x12   : > { %s233_s30 = scalar_select %p232_p7, %s992_s29, 8 }
  0x13   : > { %s447_s18 = ssub.s32 (%p984_p4), 9, %s992_s29  ;;  %s700_s27 = smul.u32 (%p984_p4), 40, %s972_s21 }
  0x14   : > { %s676_s6 = sshll.u32 %s233_s30, 3  ;;  %p448_p8 = scmp.lt.s32.totalorder (%p984_p4), %s447_s18, 5 }
  0x15   : > { %s235_s9 = scalar_lea.vmem %s1089_s0, %s676_s6  ;;  %s1040_s6 = scalar_lea.vmem (%p984_p4), %s1094_s5, %s700_s27  }
  0x16   : > { %v247_v2 = vld [vmem:[%s235_s9] sm:$0xff]  ;;  %v248_v3 = vld [vmem:[%s235_s9 + $0x8] sm:$0xff]  ;;  %v249_v5 = vld [vmem:[%s235_s9 + $0x10] sm:$0xff] }
  0x17   : > { %v252_v4 = vpack.c.bf16 %v248_v3, %v247_v2  ;;  %v250_v6 = vld [vmem:[%s235_s9 + $0x18] sm:$0xff]  ;;  %v251_v8 = vld [vmem:[%s235_s9 + $0x20] sm:$0xff] }
  0x18   : > { %v253_v7 = vpack.c.bf16 %v250_v6, %v249_v5  ;;  %v254_v9 = vpack.c.bf16 %v251_v8, %v251_v8 }
  0x19   : > { %713 = vmatmul.mubr.msk.bf16.vlgmr.msra.gmra.mrb[0].mxu0 %vm270_vm1, %v252_v4 }
  0x1a   : > { %716 = vmatprep.mubr.msk.bf16.mxu0 %vm928_vm0, %v927_v1 }
  0x21   : > { %717 = vmatmul.mubr.msk.bf16.gmra.mrb[4].mxu0 %vm270_vm1, %v253_v7 }
  0x22   : > { %720 = vmatprep.mubr.msk.bf16.mxu0 %vm928_vm0, %v927_v1 }
  0x29   : > { %721 = vmatmul.mubr.msk.bf16.gmra.mrb[8].mxu0 %vm270_vm1, %v254_v9 }
  0xec   : > { %v314_v13 = vpop.f32.mrb[0].mxu0 }
  0xed   : > { %v315_v14 = vadd.f32 %v677_v12, %v314_v13  ;;  %v714_v15 = vpop.f32.mrb[1].mxu0 }
  0xee   : > { %v317_v16 = vpop.f32.mrb[2].mxu0 }
  0xef   : > { %v318_v17 = vadd.f32 %v677_v12, %v317_v16  ;;  %v715_v18 = vpop.f32.mrb[3].mxu0  ;;  %v336_v19 = vmax.f32 %v315_v14, 0.0 }
  0xf1   : > { %v337_v20 = vmax.f32 %v318_v17, 0.0 }
  0xf3   : > { %v341_v21 = vpack.c.bf16 %v337_v20, %v336_v19 }
  0xf4   : > { %v322_v22 = vpop.f32.mrb[4].mxu0 }
  0xf5   : > { %v323_v23 = vadd.f32 %v677_v12, %v322_v22  ;;  %v718_v24 = vpop.f32.mrb[5].mxu0  ;;  %729 = vmatmul.mubr.msk.bf16.vlgmr.msra.gmra.mrb[0].mxu1 %vm367_vm2, %v341_v21 }
  0xf6   : > { %v325_v25 = vpop.f32.mrb[6].mxu0  ;;  %732 = vmatprep.mubr.msk.bf16.mxu1 %vm928_vm0, %v927_v1 }
  0xf7   : > { %v326_v26 = vadd.f32 %v677_v12, %v325_v25  ;;  %v719_v27 = vpop.f32.mrb[7].mxu0  ;;  %v338_v28 = vmax.f32 %v323_v23, 0.0 }
  0xf9   : > { %v339_v29 = vmax.f32 %v326_v26, 0.0 }
  0xfb   : > { %v342_v30 = vpack.c.bf16 %v339_v29, %v338_v28 }
  0xfc   : > { %v330_v31 = vpop.f32.mrb[8].mxu0 }
  0xfd   : > { %v331_v32 = vadd.f32 %v677_v12, %v330_v31  ;;  %v722_v33 = vpop.f32.mrb[9].mxu0  ;;  %733 = vmatmul.mubr.msk.bf16.gmra.mrb[4].mxu1 %vm367_vm2, %v342_v30 }
  0xfe   : > { %v333_v34 = vpop.f32.mrb[10].mxu0  ;;  %736 = vmatprep.mubr.msk.bf16.mxu1 %vm928_vm0, %v927_v1 }
  0xff   : > { %v340_v35 = vmax.f32 %v331_v32, 0.0  ;;  %v723_v36 = vpop.f32.mrb[11].mxu0 }
 0x101   : > { %v343_v37 = vpack.c.bf16 %v340_v35, %v340_v35 }
 0x105   : > { %737 = vmatmul.mubr.msk.bf16.gmra.mrb[8].mxu1 %vm367_vm2, %v343_v37 }
 0x1c8   : > { %v411_v39 = vpop.f32.mrb[0].mxu1 }
 0x1c9   : > { %v412_v40 = vadd.f32 %v682_v38, %v411_v39  ;;  %v730_v41 = vpop.f32.mrb[1].mxu1 }
 0x1ca   : > { %v414_v42 = vpop.f32.mrb[2].mxu1 }
 0x1cb   : > { %434 = vst.msk [vmem:[%s1021_s24] sm:$0xff] %vm433_vm3, %v412_v40  ;;  %v415_v43 = vadd.f32 %v682_v38, %v414_v42  ;;  %v731_v44 = vpop.f32.mrb[3].mxu1 }
 0x1cd   : > { %435 = vst.msk [vmem:[%s1021_s24 + $0x8] sm:$0xff] %vm433_vm3, %v415_v43 }
 0x1d0   : > { %v419_v45 = vpop.f32.mrb[4].mxu1 }
 0x1d1   : > { %v420_v46 = vadd.f32 %v682_v38, %v419_v45  ;;  %v734_v47 = vpop.f32.mrb[5].mxu1 }
 0x1d2   : > { %v422_v48 = vpop.f32.mrb[6].mxu1 }
 0x1d3   : > { %436 = vst.msk [vmem:[%s1021_s24 + $0x10] sm:$0xff] %vm433_vm3, %v420_v46  ;;  %v423_v49 = vadd.f32 %v682_v38, %v422_v48  ;;  %v735_v50 = vpop.f32.mrb[7].mxu1 }
 0x1d5   : > { %437 = vst.msk [vmem:[%s1021_s24 + $0x18] sm:$0xff] %vm433_vm3, %v423_v49  ;;  %445 = sbr.rel (!%p984_p4) target bundleno = 537 (0x219), region = 44 }
 0x1d8   : > { %v427_v51 = vpop.f32.mrb[8].mxu1 }
 0x1d9   : > { %v428_v52 = vadd.f32 %v682_v38, %v427_v51  ;;  %v738_v53 = vpop.f32.mrb[9].mxu1 }
 0x1da   : > { %v430_v54 = vpop.f32.mrb[10].mxu1 }
 0x1db   : > { %438 = vst.msk [vmem:[%s1021_s24 + $0x20] sm:$0xff] %vm433_vm3, %v428_v52  ;;  %v739_v55 = vpop.f32.mrb[11].mxu1 }
 0x1dc   : > { %s1103_s18 = smov (!%p448_p8, %s447_s18), 5 }
 0x1dd   : > { %s688_s7 = sshll.u32 %s1103_s18, 7 }
 0x1de   : > { %p691_p9 = scmp.eq.s32.totalorder %s688_s7, 0 }
 0x1df   : > { %835 = sdivrem.u32 (!%p691_p9), %s1103_s18, 5 }
 0x1e0   : > { %456 = sbr.rel (%p691_p9) target bundleno = 537 (0x219), region = 48 }
 0x1e8   : > { %s1046_s26 = spop.drf %835 }
 0x1e9   : > { %p692_p10 = scmp.le.s32.totalorder %s1046_s26, 0 }
 0x1ea   : > { %s1096_s21 = smov (!%p692_p10), %s1040_s6  ;;  %s1097_s29 = smov (!%p692_p10), %s1021_s24 }
 0x1eb   : > { %628 = sbr.rel (%p692_p10) target bundleno = 508 (0x1fc), region = 124  ;;  %s1055_s8 = smov (!%p692_p10), 0  }
 0x1ec   : > { %s1057_s9 = smov (!%p692_p10), 0  }
 0x1f2 LB: >> { %v528_v56 = vld [vmem:[%s901_s29] sm:$0xff]  ;;  %v530_v57 = vld [vmem:[%s901_s29 + $0x8] sm:$0xff]  ;;  %v532_v58 = vld [vmem:[%s901_s29 + $0x10] sm:$0xff]  ;;  %s538_s10 = sadd.s32 1, %s905_s8  ;;  %s522_s9 = sadd.s32 1, %s909_s9   ;;  %s909_s9 = sphi %s1057_s9, %s522_s9   ;;  %s905_s8 = sphi %s1055_s8, %s1098_s8   ;;  %s901_s29 = sphi %s1097_s29, %s543_s29   ;;  %s897_s21 = sphi %s1096_s21, %s544_s21  }
 0x1f3   : >> { %529 = vst [vmem:[%s897_s21] sm:$0xff] %v528_v56  ;;  %531 = vst [vmem:[%s897_s21 + $0x8] sm:$0xff] %v530_v57  ;;  %v534_v59 = vld [vmem:[%s901_s29 + $0x18] sm:$0xff]  ;;  %v536_v60 = vld [vmem:[%s901_s29 + $0x20] sm:$0xff]  ;;  %p539_p11 = scmp.ge.s32.totalorder %s538_s10, %s1046_s26  ;;  %p521_p12 = scmp.ge.s32.totalorder %s522_s9, %s1046_s26 }
 0x1f4   : >> { %533 = vst [vmem:[%s897_s21 + $0x10] sm:$0xff] %v532_v58  ;;  %535 = vst [vmem:[%s897_s21 + $0x18] sm:$0xff] %v534_v59 }
 0x1f5   : >> { %537 = vst [vmem:[%s897_s21 + $0x20] sm:$0xff] %v536_v60  ;;  %s1105_s10 = smov (%p539_p11, %s538_s10), 0  ;;  %524 = sbr.rel (!%p521_p12) target bundleno = 498 (0x1f2), region = 130 }
 0x1f6   : >> { %s541_s11 = smul.u32 40, %s1105_s10  ;;  %s1098_s8 = smov %s1105_s10 }
 0x1f8   : >> { %s543_s29 = scalar_lea.vmem %s1021_s24, %s541_s11 [#allocation2]   ;;  %s544_s21 = scalar_lea.vmem %s1040_s6, %s541_s11  }
 0x1fc PF: > { %837 = sdivrem.u32 %s1103_s18, 5 }
 0x1fd   : > { %s693_s12 = smul.u32 40, %s1046_s26 }
 0x1ff   : > { %s549_s13 = scalar_lea.vmem %s1021_s24, %s693_s12 [#allocation2]   ;;  %s551_s14 = scalar_lea.vmem %s1040_s6, %s693_s12  }
 0x205   : > { %s838_s15 = spop.drf %837 }
 0x206   : > { %p695_p13 = scmp.le.s32.totalorder %s838_s15, 0 }
 0x207   : > { %s911_s16 = smov (!%p695_p13), %s551_s14   ;;  %s915_s17 = smov (!%p695_p13), %s549_s13  }
 0x208   : > { %642 = sbr.rel (%p695_p13) target bundleno = 537 (0x219), region = 135  ;;  %s919_s20 = smov (!%p695_p13), 0  }
 0x209   : > { %s923_s23 = smov (!%p695_p13), 0  }
 0x20f LB: >> { %v561_v61 = vld [vmem:[%s917_s17] sm:$0xff]  ;;  %s563_s27 = sadd.s32 1, %s921_s20  ;;  %s555_s23 = sadd.s32 1, %s925_s23   ;;  %s925_s23 = sphi %s923_s23, %s555_s23   ;;  %s921_s20 = sphi %s919_s20, %s920_s20   ;;  %s917_s17 = sphi %s915_s17, %s568_s17   ;;  %s913_s16 = sphi %s911_s16, %s569_s16  }
 0x210   : >> { %562 = vst [vmem:[%s913_s16] sm:$0xff] %v561_v61  ;;  %p564_p0 = scmp.ge.s32.totalorder %s563_s27, %s838_s15  ;;  %p554_p1 = scmp.ge.s32.totalorder %s555_s23, %s838_s15 }
 0x212   : >> { %s1107_s27 = smov (%p564_p0, %s563_s27), 0  ;;  %557 = sbr.rel (!%p554_p1) target bundleno = 527 (0x20f), region = 141 }
 0x213   : >> { %s696_s24 = sshll.u32 %s1107_s27, 3  ;;  %s920_s20 = smov %s1107_s27  }
 0x214   : >> { %s568_s17 = scalar_lea.vmem %s549_s13, %s696_s24 [#allocation2]   ;;  %s569_s16 = scalar_lea.vmem %s551_s14, %s696_s24  }
 0x219 PF: > { %p12_p2 = scmp.ge.s32.totalorder %s974_s22, 4   ;;  %s1099_s18 = smov %s889_s19 }
 0x21a   : > { %s1100_s19 = smov %s982_s25  ;;  %s1101_s20 = smov %s974_s22 }
 0x21b   :  { %14 = sbr.rel (!%p12_p2) target bundleno = 2 (0x2), region = 152 }

</bundles_post_ra>
